<compile_context>
chip_gen: v7x
topology: tpu7x:2x2x1
jax: 0.10.0
libtpu: 0.0.40
codegen_flags: <defaults>
</compile_context>

<pallas_src>
import functools

import numpy as np
import jax
import jax.numpy as jnp
from jax.experimental import pallas as pl
from jax.experimental.pallas import tpu as pltpu

LANE = 128  # pad feature / class axes to one full lane group


# ----------------------------------------------------------------------------
# Fused kernel: all conv branches -> bias -> ReLU -> masked max-pool -> fc1 -> fc2
# One grid step per batch block (whole batch here).
# ----------------------------------------------------------------------------
def fused_cnn_kernel(x_ref, mask_ref, wc_ref, bc_ref, w1_ref, b1_ref,
                     w2_ref, b2_ref, o_ref, *, b_blk, l_out_pad):
    # x_ref   : (b_blk*l_out_pad, K)     bf16  pre-im2col'd embedded windows
    # mask_ref: (b_blk*l_out_pad, F_pad) f32   1 where the position is a real
    #                                          conv output for that feature's
    #                                          branch, else 0
    # wc_ref  : (K, F_pad)  bf16  packed conv weights (all branches)
    # bc_ref  : (1, F_pad)  f32   packed conv bias
    # w1_ref  : (F_pad, F_pad) bf16 ; b1_ref : (1, F_pad) f32
    # w2_ref  : (F_pad, C_pad) bf16 ; b2_ref : (1, C_pad) f32
    # o_ref   : (b_blk, C_pad) f32   lane-dense logits (sliced in the wrapper)
    f_pad = wc_ref.shape[1]

    # One MXU contraction covers every conv branch for the whole batch block.
    acc = jnp.dot(x_ref[...], wc_ref[...],
                  preferred_element_type=jnp.float32)            # (b*l, F_pad)
    # Mask-to-0 is exact because every valid activation is ReLU'd (>= 0).
    act = jnp.maximum(acc + bc_ref[...], 0.0) * mask_ref[...]

    # F.max_pool1d over the full sequence axis, per example.  l_out_pad is a
    # multiple of 8, so this reshape is sublane-aligned (no relayout).
    pooled = jnp.max(act.reshape(b_blk, l_out_pad, f_pad), axis=1)  # (b, F_pad)

    h = jnp.dot(pooled.astype(w1_ref.dtype), w1_ref[...],
                preferred_element_type=jnp.float32) + b1_ref[...]
    # TODO(synk): Dropout is the identity in eval mode; training-mode dropout
    # and the mixup (mix=True) branch are not implemented.
    logits = jnp.dot(h.astype(w2_ref.dtype), w2_ref[...],
                     preferred_element_type=jnp.float32) + b2_ref[...]
    o_ref[...] = logits


# ----------------------------------------------------------------------------
# Parameters (PyTorch-like layout) + packing into kernel-ready, lane-padded form
# ----------------------------------------------------------------------------
def init_params(key, vocab_size, emb_dim, fmaps, strides, num_classes):
    keys = jax.random.split(key, 3 + 2 * len(strides))
    params = {}
    params["embedding"] = 0.1 * jax.random.normal(
        keys[0], (vocab_size, emb_dim), jnp.float32)
    params["convs"] = []
    for i, s in enumerate(strides):
        w = 0.1 * jax.random.normal(keys[1 + 2 * i], (s, emb_dim, fmaps),
                                    jnp.float32)
        b = 0.1 * jax.random.normal(keys[2 + 2 * i], (1, fmaps), jnp.float32)
        params["convs"].append((w, b))
    f_total = len(strides) * fmaps
    params["fc1_w"] = 0.1 * jax.random.normal(
        keys[-2], (f_total, f_total), jnp.float32)
    params["fc1_b"] = 0.1 * jnp.ones((1, f_total), jnp.float32)
    params["fc2_w"] = 0.1 * jax.random.normal(
        keys[-1], (f_total, num_classes), jnp.float32)
    params["fc2_b"] = 0.1 * jnp.ones((1, num_classes), jnp.float32)
    return params


def _pad_to(a, shape):
    return jnp.pad(a, [(0, t - s) for s, t in zip(a.shape, shape)])


def pack_params(params, strides, emb_dim, fmaps,
                matmul_dtype=jnp.bfloat16, f_pad=LANE, c_pad=LANE):
    """Pack conv branches into one (s_max*E, F_pad) matrix; lane-pad FC weights.

    Branch with stride s is right-aligned into taps [s_max - s, s_max): with a
    shared zero pad of s_max-1 on both sides of the sequence, position i then
    reproduces exactly PyTorch's Conv2d(padding=(s-1, 0)) output at i.
    All padded rows/columns are zero, so padded lanes stay exactly 0 end-to-end.
    """
    s_max = max(strides)
    f_total = len(strides) * fmaps
    w_comb = jnp.zeros((s_max, emb_dim, f_total), jnp.float32)
    b_comb = jnp.zeros((1, f_total), jnp.float32)
    for i, ((w, b), s) in enumerate(zip(params["convs"], strides)):
        w_comb = w_comb.at[s_max - s:, :, i * fmaps:(i + 1) * fmaps].set(w)
        b_comb = b_comb.at[:, i * fmaps:(i + 1) * fmaps].set(b)
    conv_w = _pad_to(w_comb.reshape(s_max * emb_dim, f_total),
                     (s_max * emb_dim, f_pad))
    return {
        # bf16 table: halves gather/DMA bytes; accumulation stays fp32 in-kernel.
        "embedding": params["embedding"].astype(matmul_dtype),
        "conv_w": conv_w.astype(matmul_dtype),
        "conv_b": _pad_to(b_comb, (1, f_pad)),
        "fc1_w": _pad_to(params["fc1_w"], (f_pad, f_pad)).astype(matmul_dtype),
        "fc1_b": _pad_to(params["fc1_b"], (1, f_pad)),
        "fc2_w": _pad_to(params["fc2_w"], (f_pad, c_pad)).astype(matmul_dtype),
        "fc2_b": _pad_to(params["fc2_b"], (1, c_pad)),
    }


# ----------------------------------------------------------------------------
# Forward wrapper: embedding gather + shared pad + im2col (glue, done once);
# everything else runs inside the single fused Pallas kernel.
# ----------------------------------------------------------------------------
def cnn_forward(packed, x, *, strides, fmaps, num_classes):
    emb_tbl = packed["embedding"]                      # (V, E) bf16
    B, L = x.shape
    E = emb_tbl.shape[1]
    s_max = max(strides)
    pad = s_max - 1
    l_out = L + s_max - 1                              # longest branch output len
    l_out_pad = ((l_out + 7) // 8) * 8                 # sublane-aligned rows/example
    K = s_max * E                                      # 128 here (full MXU K)
    f_pad = packed["conv_w"].shape[1]
    c_pad = packed["fc2_w"].shape[1]

    # NOTE: jnp.take clamps out-of-range ids (PyTorch Embedding would error).
    emb = jnp.take(emb_tbl, x, axis=0)                               # (B, L, E)
    e_pad = jnp.pad(emb, ((0, 0), (pad, (l_out_pad - l_out) + pad), (0, 0)))
    # im2col once in the wrapper: lane-dense (B, l_out_pad, s_max*E) bf16.
    im2col = jnp.concatenate(
        [e_pad[:, k:k + l_out_pad, :] for k in range(s_max)], axis=-1)
    im2col = im2col.reshape(B * l_out_pad, K)

    # Static validity mask (constant): position i is a real conv output for the
    # branch of feature f iff i < L + stride_f - 1; padded rows/lanes stay 0.
    mask_np = np.zeros((l_out_pad, f_pad), np.float32)
    for j, s in enumerate(strides):
        mask_np[: L + s - 1, j * fmaps:(j + 1) * fmaps] = 1.0
    mask = jnp.asarray(np.tile(mask_np, (B, 1)))                     # (B*l_out_pad, f_pad)

    # Whole batch per grid step at these sizes; when B/L are scaled, split the
    # batch into blocks of >= ~128 rows each (and re-derive VMEM per generation).
    b_blk = B
    kernel = functools.partial(fused_cnn_kernel, b_blk=b_blk, l_out_pad=l_out_pad)
    grid_spec = pltpu.PrefetchScalarGridSpec(
        num_scalar_prefetch=0,
        grid=(B // b_blk,),
        in_specs=[
            pl.BlockSpec((b_blk * l_out_pad, K), lambda b: (b, 0)),      # im2col
            pl.BlockSpec((b_blk * l_out_pad, f_pad), lambda b: (b, 0)),  # mask
            pl.BlockSpec((K, f_pad), lambda b: (0, 0)),                  # conv_w
            pl.BlockSpec((1, f_pad), lambda b: (0, 0)),                  # conv_b
            pl.BlockSpec((f_pad, f_pad), lambda b: (0, 0)),              # fc1_w
            pl.BlockSpec((1, f_pad), lambda b: (0, 0)),                  # fc1_b
            pl.BlockSpec((f_pad, c_pad), lambda b: (0, 0)),              # fc2_w
            pl.BlockSpec((1, c_pad), lambda b: (0, 0)),                  # fc2_b
        ],
        out_specs=pl.BlockSpec((b_blk, c_pad), lambda b: (b, 0)),
    )
    out = pl.pallas_call(
        kernel,
        out_shape=jax.ShapeDtypeStruct((B, c_pad), jnp.float32),
        grid_spec=grid_spec,
        compiler_params=pltpu.CompilerParams(
            dimension_semantics=("parallel",)),
    )(im2col, mask, packed["conv_w"], packed["conv_b"],
      packed["fc1_w"], packed["fc1_b"], packed["fc2_w"], packed["fc2_b"])
    return out[:, :num_classes]                                      # (B, C)


# ----------------------------------------------------------------------------
# Pure-JAX fp32 reference (mirrors the PyTorch forward, per-branch)
# ----------------------------------------------------------------------------
def reference_forward(params, x, strides):
    emb = jnp.take(params["embedding"], x, axis=0)                   # (B, L, E)
    B, L, _ = emb.shape
    pooled = []
    for (w, b), s in zip(params["convs"], strides):
        pad = s - 1
        ep = jnp.pad(emb, ((0, 0), (pad, pad), (0, 0)))
        l_out = L + s - 1
        acc = jnp.zeros((B, l_out, w.shape[2]), jnp.float32)
        for k in range(s):
            acc = acc + jnp.einsum("ble,ef->blf", ep[:, k:k + l_out, :], w[k])
        act = jnp.maximum(acc + b[None, :, :], 0.0)
        pooled.append(jnp.max(act, axis=1))
    feats = jnp.concatenate(pooled, axis=1)
    h = feats @ params["fc1_w"] + params["fc1_b"]
    return h @ params["fc2_w"] + params["fc2_b"]


if __name__ == "__main__":
    VOCAB, EMB, FMAPS = 50, 32, 8
    STRIDES = (2, 3, 4)
    NUM_CLASSES = 2
    B, L = 2, 16

    key = jax.random.PRNGKey(0)
    k_params, k_x = jax.random.split(key)
    params = init_params(k_params, VOCAB, EMB, FMAPS, STRIDES, NUM_CLASSES)
    packed = pack_params(params, STRIDES, EMB, FMAPS)
    x = jax.random.randint(k_x, (B, L), 0, VOCAB, dtype=jnp.int32)

    fwd = jax.jit(functools.partial(
        cnn_forward, strides=STRIDES, fmaps=FMAPS, num_classes=NUM_CLASSES))
    logits = fwd(packed, x)
    jax.block_until_ready(logits)
    assert logits.shape == (B, NUM_CLASSES)

    ref = reference_forward(params, x, STRIDES)
    max_err = float(jnp.max(jnp.abs(logits - ref)))
    assert max_err < 5e-2, f"mismatch vs reference: {max_err}"

    print("KERNEL_OK")
</pallas_src>

<mosaic_0001>
module attributes {stable_mosaic.version = 11 : i64} {
  func.func @fused_cnn_kernel(%arg0: i32, %arg1: memref<48x128xbf16, #tpu.memory_space<vmem>>, %arg2: memref<48x128xf32, #tpu.memory_space<vmem>>, %arg3: memref<128x128xbf16, #tpu.memory_space<vmem>>, %arg4: memref<1x128xf32, #tpu.memory_space<vmem>>, %arg5: memref<128x128xbf16, #tpu.memory_space<vmem>>, %arg6: memref<1x128xf32, #tpu.memory_space<vmem>>, %arg7: memref<128x128xbf16, #tpu.memory_space<vmem>>, %arg8: memref<1x128xf32, #tpu.memory_space<vmem>>, %arg9: memref<2x128xf32, #tpu.memory_space<vmem>>) attributes {dimension_semantics = [#tpu.dimension_semantics<parallel>], iteration_bounds = array<i64: 1>, scalar_prefetch = 0 : i64, scratch_operands = 0 : i64, tpu.core_type = #tpu.core_type<tc>, window_params = [{transform_indices = @transform_0, window_bounds = array<i64: 48, 128>}, {transform_indices = @transform_1, window_bounds = array<i64: 48, 128>}, {pipeline_mode = #tpu.pipeline_mode<synchronous>, transform_indices = @transform_2, window_bounds = array<i64: 128, 128>}, {pipeline_mode = #tpu.pipeline_mode<synchronous>, transform_indices = @transform_3, window_bounds = array<i64: 1, 128>}, {pipeline_mode = #tpu.pipeline_mode<synchronous>, transform_indices = @transform_4, window_bounds = array<i64: 128, 128>}, {pipeline_mode = #tpu.pipeline_mode<synchronous>, transform_indices = @transform_5, window_bounds = array<i64: 1, 128>}, {pipeline_mode = #tpu.pipeline_mode<synchronous>, transform_indices = @transform_6, window_bounds = array<i64: 128, 128>}, {pipeline_mode = #tpu.pipeline_mode<synchronous>, transform_indices = @transform_7, window_bounds = array<i64: 1, 128>}, {transform_indices = @transform_8, window_bounds = array<i64: 2, 128>}]} {
    %c0 = arith.constant 0 : index
    %c0_0 = arith.constant 0 : index
    %0 = vector.load %arg1[%c0, %c0_0] : memref<48x128xbf16, #tpu.memory_space<vmem>>, vector<48x128xbf16>
    %c0_1 = arith.constant 0 : index
    %c0_2 = arith.constant 0 : index
    %1 = vector.load %arg3[%c0_1, %c0_2] : memref<128x128xbf16, #tpu.memory_space<vmem>>, vector<128x128xbf16>
    %cst = arith.constant dense<0.000000e+00> : vector<48x128xf32>
    %2 = tpu.matmul %0, %1, %cst {dimension_numbers = #tpu.dot_dimension_numbers<[1], [0], [0], [1], [0, 0, 1, 1], [], []>} : vector<48x128xbf16>, vector<128x128xbf16>, vector<48x128xf32> -> vector<48x128xf32>
    %c0_3 = arith.constant 0 : index
    %c0_4 = arith.constant 0 : index
    %3 = vector.load %arg4[%c0_3, %c0_4] : memref<1x128xf32, #tpu.memory_space<vmem>>, vector<1x128xf32>
    %4 = vector.broadcast %3 : vector<1x128xf32> to vector<48x128xf32>
    %5 = arith.addf %2, %4 : vector<48x128xf32>
    %cst_5 = arith.constant 0.000000e+00 : f32
    %6 = vector.broadcast %cst_5 : f32 to vector<48x128xf32>
    %7 = arith.maximumf %5, %6 : vector<48x128xf32>
    %c0_6 = arith.constant 0 : index
    %c0_7 = arith.constant 0 : index
    %8 = vector.load %arg2[%c0_6, %c0_7] : memref<48x128xf32, #tpu.memory_space<vmem>>, vector<48x128xf32>
    %9 = arith.mulf %7, %8 : vector<48x128xf32>
    %10 = vector.shape_cast %9 : vector<48x128xf32> to vector<2x24x128xf32>
    %cst_8 = arith.constant dense<0xFF800000> : vector<2x128xf32>
    %11 = vector.multi_reduction <maximumf>, %10, %cst_8 [1] : vector<2x24x128xf32> to vector<2x128xf32>
    %12 = arith.truncf %11 : vector<2x128xf32> to vector<2x128xbf16>
    %c0_9 = arith.constant 0 : index
    %c0_10 = arith.constant 0 : index
    %13 = vector.load %arg5[%c0_9, %c0_10] : memref<128x128xbf16, #tpu.memory_space<vmem>>, vector<128x128xbf16>
    %cst_11 = arith.constant dense<0.000000e+00> : vector<2x128xf32>
    %14 = tpu.matmul %12, %13, %cst_11 {dimension_numbers = #tpu.dot_dimension_numbers<[1], [0], [0], [1], [0, 0, 1, 1], [], []>} : vector<2x128xbf16>, vector<128x128xbf16>, vector<2x128xf32> -> vector<2x128xf32>
    %c0_12 = arith.constant 0 : index
    %c0_13 = arith.constant 0 : index
    %15 = vector.load %arg6[%c0_12, %c0_13] : memref<1x128xf32, #tpu.memory_space<vmem>>, vector<1x128xf32>
    %16 = vector.broadcast %15 : vector<1x128xf32> to vector<2x128xf32>
    %17 = arith.addf %14, %16 : vector<2x128xf32>
    %18 = arith.truncf %17 : vector<2x128xf32> to vector<2x128xbf16>
    %c0_14 = arith.constant 0 : index
    %c0_15 = arith.constant 0 : index
    %19 = vector.load %arg7[%c0_14, %c0_15] : memref<128x128xbf16, #tpu.memory_space<vmem>>, vector<128x128xbf16>
    %cst_16 = arith.constant dense<0.000000e+00> : vector<2x128xf32>
    %20 = tpu.matmul %18, %19, %cst_16 {dimension_numbers = #tpu.dot_dimension_numbers<[1], [0], [0], [1], [0, 0, 1, 1], [], []>} : vector<2x128xbf16>, vector<128x128xbf16>, vector<2x128xf32> -> vector<2x128xf32>
    %c0_17 = arith.constant 0 : index
    %c0_18 = arith.constant 0 : index
    %21 = vector.load %arg8[%c0_17, %c0_18] : memref<1x128xf32, #tpu.memory_space<vmem>>, vector<1x128xf32>
    %22 = vector.broadcast %21 : vector<1x128xf32> to vector<2x128xf32>
    %23 = arith.addf %20, %22 : vector<2x128xf32>
    %c0_19 = arith.constant 0 : index
    %c0_20 = arith.constant 0 : index
    %24 = vector.load %arg9[%c0_19, %c0_20] : memref<2x128xf32, #tpu.memory_space<vmem>>, vector<2x128xf32>
    tpu.vector_store %arg9[%c0_19, %c0_20], %23 {strides = array<i32>} : memref<2x128xf32, #tpu.memory_space<vmem>>, vector<2x128xf32>,
    return
  }
  func.func @transform_0(%arg0: i32) -> (i32, i32) {
    %c0_i32 = arith.constant 0 : i32
    %c0_i32_0 = arith.constant 0 : i32
    return %arg0, %c0_i32 : i32, i32
  }
  func.func @transform_1(%arg0: i32) -> (i32, i32) {
    %c0_i32 = arith.constant 0 : i32
    %c0_i32_0 = arith.constant 0 : i32
    return %arg0, %c0_i32 : i32, i32
  }
  func.func @transform_2(%arg0: i32) -> (i32, i32) {
    %c0_i32 = arith.constant 0 : i32
    %c0_i32_0 = arith.constant 0 : i32
    %c0_i32_1 = arith.constant 0 : i32
    return %c0_i32, %c0_i32_0 : i32, i32
  }
  func.func @transform_3(%arg0: i32) -> (i32, i32) {
    %c0_i32 = arith.constant 0 : i32
    %c0_i32_0 = arith.constant 0 : i32
    %c0_i32_1 = arith.constant 0 : i32
    return %c0_i32, %c0_i32_0 : i32, i32
  }
  func.func @transform_4(%arg0: i32) -> (i32, i32) {
    %c0_i32 = arith.constant 0 : i32
    %c0_i32_0 = arith.constant 0 : i32
    %c0_i32_1 = arith.constant 0 : i32
    return %c0_i32, %c0_i32_0 : i32, i32
  }
  func.func @transform_5(%arg0: i32) -> (i32, i32) {
    %c0_i32 = arith.constant 0 : i32
    %c0_i32_0 = arith.constant 0 : i32
    %c0_i32_1 = arith.constant 0 : i32
    return %c0_i32, %c0_i32_0 : i32, i32
  }
  func.func @transform_6(%arg0: i32) -> (i32, i32) {
    %c0_i32 = arith.constant 0 : i32
    %c0_i32_0 = arith.constant 0 : i32
    %c0_i32_1 = arith.constant 0 : i32
    return %c0_i32, %c0_i32_0 : i32, i32
  }
  func.func @transform_7(%arg0: i32) -> (i32, i32) {
    %c0_i32 = arith.constant 0 : i32
    %c0_i32_0 = arith.constant 0 : i32
    %c0_i32_1 = arith.constant 0 : i32
    return %c0_i32, %c0_i32_0 : i32, i32
  }
  func.func @transform_8(%arg0: i32) -> (i32, i32) {
    %c0_i32 = arith.constant 0 : i32
    %c0_i32_0 = arith.constant 0 : i32
    return %arg0, %c0_i32 : i32, i32
  }
}

</mosaic_0001>

<bundles_post_ra>
// kernel: cnn_forward.1
= control target key start
LH: loop header
LB: loop body
LE: loop exit
PB: predicated region body
PF: predicated region fallthrough
CT: control target
= control target key end

     0   :  { %v646_v1 = vmov 0.0   ;;  %vm647_vm0 = vmmov 0   ;;  %s848_s0 = inlined_call_operand.vmem [shape: bf16[48,128], index: 0, kind: input, shape index: {}]   ;;  %s849_s1 = inlined_call_operand.vmem [shape: f32[48,128], index: 1, kind: input, shape index: {}]   ;;  %s850_s2 = inlined_call_operand.vmem [shape: bf16[128,128], index: 2, kind: input, shape index: {}]   ;;  %s851_s3 = inlined_call_operand.vmem [shape: f32[1,128], index: 3, kind: input, shape index: {}]   ;;  %s852_s4 = inlined_call_operand.vmem [shape: bf16[128,128], index: 4, kind: input, shape index: {}]   ;;  %s853_s5 = inlined_call_operand.vmem [shape: f32[1,128], index: 5, kind: input, shape index: {}]   ;;  %s854_s6 = inlined_call_operand.vmem [shape: bf16[128,128], index: 6, kind: input, shape index: {}]   ;;  %s855_s7 = inlined_call_operand.vmem [shape: f32[1,128], index: 7, kind: input, shape index: {}]   ;;  %s856_s8 = inlined_call_operand.hbm [shape: f32[2,128], index: 8, kind: output, shape index: {}]  }
   0x1   :  { %v595_v0 = vld [vmem:[%s850_s2] sm:$0xff]   ;;  %524 = vmatprep.subr.bf16.mxu0 %v646_v1  ;;  %552 = vmatprep.subr.bf16.mxu1 %v646_v1  ;;  %v596_v2 = vld [vmem:[%s850_s2 + $0x8] sm:$0xff]   ;;  %v597_v3 = vld [vmem:[%s850_s2 + $0x10] sm:$0xff]  }
   0x2   :  { %525 = vmatpush3.bf16.msra.mxu0 %v595_v0  ;;  %540 = vmatprep.mubr.msk.bf16.mxu0 %vm647_vm0, %v646_v1  ;;  %v598_v4 = vld [vmem:[%s850_s2 + $0x18] sm:$0xff]   ;;  %v599_v5 = vld [vmem:[%s850_s2 + $0x20] sm:$0xff]   ;;  %v600_v6 = vld [vmem:[%s850_s2 + $0x28] sm:$0xff]  }
   0x3   :  { %526 = vmatprep.subr.bf16.mxu0 %v646_v1  ;;  %568 = vmatprep.mubr.msk.bf16.mxu1 %vm647_vm0, %v646_v1  ;;  %v601_v7 = vld [vmem:[%s850_s2 + $0x30] sm:$0xff]  }
   0x6   :  { %527 = vmatpush3.bf16.msra.mxu0 %v596_v2 }
   0x7   :  { %528 = vmatprep.subr.bf16.mxu0 %v646_v1 }
   0xa   :  { %529 = vmatpush3.bf16.msra.mxu0 %v597_v3 }
   0xb   :  { %530 = vmatprep.subr.bf16.mxu0 %v646_v1 }
   0xe   :  { %531 = vmatpush3.bf16.msra.mxu0 %v598_v4 }
   0xf   :  { %532 = vmatprep.subr.bf16.mxu0 %v646_v1 }
  0x12   :  { %533 = vmatpush3.bf16.msra.mxu0 %v599_v5 }
  0x13   :  { %534 = vmatprep.subr.bf16.mxu0 %v646_v1 }
  0x16   :  { %535 = vmatpush3.bf16.msra.mxu0 %v600_v6 }
  0x17   :  { %13 = vsyncpa [#allocation3], 0  ;;  %536 = vmatprep.subr.bf16.mxu0 %v646_v1  ;;  %v602_v8 = vld [vmem:[%s850_s2 + $0x38] sm:$0xff]   ;;  %v603_v9 = vld [vmem:[%s848_s0] sm:$0xff]   ;;  %vm246_vm1 = vcmask 1041409   ;;  %s648_s2 = smov [#allocation2]  }
  0x18   :  { %v604_v10 = vld [vmem:[%s848_s0 + $0x8] sm:$0xff]   ;;  %v605_v11 = vld [vmem:[%s848_s0 + $0x10] sm:$0xff]   ;;  %v606_v12 = vld [vmem:[%s852_s4] sm:$0xff]   ;;  %s457_s25 = sshll.u32 %s648_s2, 4  ;;  %s458_s25 = int_to_ptr.vmem [resolvable:$true] %s457_s25 }
  0x19   :  { %553 = vmatpush3.bf16.msra.mxu1 %v606_v12  ;;  %v607_v13 = vld [vmem:[%s852_s4 + $0x8] sm:$0xff]   ;;  %v608_v14 = vld [vmem:[%s852_s4 + $0x10] sm:$0xff]   ;;  %v609_v15 = vld [vmem:[%s852_s4 + $0x18] sm:$0xff]   ;;  %p627_p1 = scmp.lt.s32.totalorder %s458_s25, %s458_s25 }
  0x1a   :  { %537 = vmatpush3.bf16.msra.mxu0 %v601_v7  ;;  %554 = vmatprep.subr.bf16.mxu1 %v646_v1  ;;  %v610_v16 = vld [vmem:[%s852_s4 + $0x20] sm:$0xff]   ;;  %v611_v17 = vld [vmem:[%s852_s4 + $0x28] sm:$0xff]   ;;  %v612_v18 = vld [vmem:[%s852_s4 + $0x30] sm:$0xff]  }
  0x1b   :  { %538 = vmatprep.subr.bf16.mxu0 %v646_v1  ;;  %v613_v19 = vld [vmem:[%s852_s4 + $0x38] sm:$0xff]   ;;  %v614_v20 = vld [vmem:[%s854_s6] sm:$0xff]   ;;  %v615_v21 = vld [vmem:[%s854_s6 + $0x8] sm:$0xff]  }
  0x1c   :  { %v616_v22 = vld [vmem:[%s854_s6 + $0x10] sm:$0xff]   ;;  %v617_v23 = vld [vmem:[%s854_s6 + $0x18] sm:$0xff]   ;;  %v618_v24 = vld [vmem:[%s854_s6 + $0x20] sm:$0xff]  }
  0x1d   :  { %555 = vmatpush3.bf16.msra.mxu1 %v607_v13  ;;  %v619_v25 = vld [vmem:[%s854_s6 + $0x28] sm:$0xff]   ;;  %v620_v26 = vld [vmem:[%s854_s6 + $0x30] sm:$0xff]   ;;  %v465_v29 = vld [vmem:[%s851_s3] ss:$0 sm:$0xff] }
  0x1e   :  { %539 = vmatpush3.bf16.msra.mxu0 %v602_v8  ;;  %556 = vmatprep.subr.bf16.mxu1 %v646_v1  ;;  %v189_v38 = vld [vmem:[%s849_s1] sm:$0xff]  ;;  %v191_v39 = vld [vmem:[%s849_s1 + $0x10] sm:$0xff]  ;;  %v190_v44 = vld [vmem:[%s849_s1 + $0x8] sm:$0xff] }
  0x1f   :  { %572 = vmatprep.subr.bf16.mxu0 %v646_v1  ;;  %v192_v59 = vld [vmem:[%s849_s1 + $0x18] sm:$0xff]  ;;  %v194_v60 = vld [vmem:[%s849_s1 + $0x28] sm:$0xff]  ;;  %v193_v0 = vld [vmem:[%s849_s1 + $0x20] sm:$0xff] }
  0x21   :  { %541 = vmatmul.mubr.bf16.vlgmr.msra.gmra.mrb[0].mxu0 %v603_v9  ;;  %557 = vmatpush3.bf16.msra.mxu1 %v608_v14 }
  0x22   :  { %544 = vmatprep.mubr.msk.bf16.mxu0 %vm647_vm0, %v646_v1  ;;  %558 = vmatprep.subr.bf16.mxu1 %v646_v1 }
  0x23   :  { %573 = vmatpush3.bf16.msra.mxu0 %v614_v20 }
  0x24   :  { %574 = vmatprep.subr.bf16.mxu0 %v646_v1 }
  0x25   :  { %559 = vmatpush3.bf16.msra.mxu1 %v609_v15 }
  0x26   :  { %560 = vmatprep.subr.bf16.mxu1 %v646_v1 }
  0x27   :  { %575 = vmatpush3.bf16.msra.mxu0 %v615_v21 }
  0x28   :  { %576 = vmatprep.subr.bf16.mxu0 %v646_v1 }
  0x29   :  { %545 = vmatmul.mubr.bf16.gmra.mrb[4].mxu0 %v604_v10  ;;  %561 = vmatpush3.bf16.msra.mxu1 %v610_v16 }
  0x2a   :  { %548 = vmatprep.mubr.msk.bf16.mxu0 %vm647_vm0, %v646_v1  ;;  %562 = vmatprep.subr.bf16.mxu1 %v646_v1 }
  0x2b   :  { %577 = vmatpush3.bf16.msra.mxu0 %v616_v22  ;;  %v621_v22 = vld [vmem:[%s854_s6 + $0x38] sm:$0xff]  }
  0x2c   :  { %578 = vmatprep.subr.bf16.mxu0 %v646_v1 }
  0x2d   :  { %563 = vmatpush3.bf16.msra.mxu1 %v611_v17 }
  0x2e   :  { %564 = vmatprep.subr.bf16.mxu1 %v646_v1 }
  0x2f   :  { %579 = vmatpush3.bf16.msra.mxu0 %v617_v23  ;;  %v477_v23 = vld [vmem:[%s853_s5] ss:$0 sm:$0xff]  ;;  %s622_s5 = scalar_lea.vmem %s458_s25, 32 }
  0x30   :  { %580 = vmatprep.subr.bf16.mxu0 %v646_v1  ;;  %p623_p0 = scmp.ne.s32.totalorder %s458_s25, %s622_s5  ;;  %p628_p2 = scmp.lt.s32.totalorder %s622_s5, %s622_s5 }
  0x31   :  { %549 = vmatmul.mubr.bf16.gmra.mrb[8].mxu0 %v605_v11  ;;  %565 = vmatpush3.bf16.msra.mxu1 %v612_v18 }
  0x32   :  { %588 = vmatprep.mubr.msk.bf16.mxu0 %vm647_vm0, %v646_v1  ;;  %566 = vmatprep.subr.bf16.mxu1 %v646_v1  ;;  %p629_p3 = por %p628_p2, %p627_p1 }
  0x33   :  { %581 = vmatpush3.bf16.msra.mxu0 %v618_v24 }
  0x34   :  { %582 = vmatprep.subr.bf16.mxu0 %v646_v1  ;;  %p630_p4 = pnand %p629_p3, %p623_p0 }
  0x35   :  { %567 = vmatpush3.bf16.msra.mxu1 %v613_v19 }
  0x37   :  { %583 = vmatpush3.bf16.msra.mxu0 %v619_v25 }
  0x38   :  { %584 = vmatprep.subr.bf16.mxu0 %v646_v1 }
  0x3b   :  { %585 = vmatpush3.bf16.msra.mxu0 %v620_v26 }
  0x3c   :  { %586 = vmatprep.subr.bf16.mxu0 %v646_v1 }
  0x3f   :  { %587 = vmatpush3.bf16.msra.mxu0 %v621_v22 }
  0xf4   :  { %v160_v27 = vpop.f32.mrb[0].mxu0 }
  0xf5   :  { %v542_v28 = vpop.f32.mrb[1].mxu0  ;;  %v161_v32 = vadd.f32 %v465_v29, %v160_v27 }
  0xf6   :  { %v163_v30 = vpop.f32.mrb[2].mxu0 }
  0xf7   :  { %v543_v31 = vpop.f32.mrb[3].mxu0  ;;  %v164_v33 = vadd.f32 %v465_v29, %v163_v30  ;;  %v183_v35 = vmax.f32 %v161_v32, 0.0  ;;  %v486_v30 = vld [vmem:[%s855_s7] ss:$0 sm:$0xff] }
  0xf9   :  { %v184_v41 = vmax.f32 %v164_v33, 0.0  ;;  %v195_v45 = vmul.f32 %v189_v38, %v183_v35 }
  0xfb   :  { %v196_v47 = vmul.f32 %v190_v44, %v184_v41 }
  0xfc   :  { %v168_v34 = vpop.f32.mrb[4].mxu0 }
  0xfd   :  { %v169_v36 = vadd.f32 %v465_v29, %v168_v34  ;;  %v546_v37 = vpop.f32.mrb[5].mxu0 }
  0xfe   :  { %v171_v40 = vpop.f32.mrb[6].mxu0 }
  0xff   :  { %v185_v42 = vmax.f32 %v169_v36, 0.0  ;;  %v547_v43 = vpop.f32.mrb[7].mxu0  ;;  %v172_v49 = vadd.f32 %v465_v29, %v171_v40 }
 0x101   :  { %v197_v46 = vmul.f32 %v191_v39, %v185_v42  ;;  %v186_v56 = vmax.f32 %v172_v49, 0.0 }
 0x103   :  { %v201_v48 = vmax.f32 %v195_v45, %v197_v46  ;;  %v198_v2 = vmul.f32 %v192_v59, %v186_v56 }
 0x104   :  { %v176_v50 = vpop.f32.mrb[8].mxu0 }
 0x105   :  { %v202_v51 = vmax.f32 %v201_v48, %v196_v47  ;;  %v177_v52 = vadd.f32 %v465_v29, %v176_v50  ;;  %v550_v53 = vpop.f32.mrb[9].mxu0 }
 0x106   :  { %v179_v54 = vpop.f32.mrb[10].mxu0 }
 0x107   :  { %v203_v55 = vrot.slane %v202_v51, 4  ;;  %v180_v57 = vadd.f32 %v465_v29, %v179_v54  ;;  %v551_v58 = vpop.f32.mrb[11].mxu0  ;;  %v187_v62 = vmax.f32 %v177_v52, 0.0 }
 0x109   :  { %v204_v61 = vmax.f32 %v202_v51, %v203_v55  ;;  %v188_v63 = vmax.f32 %v180_v57, 0.0  ;;  %v199_v4 = vmul.f32 %v193_v0, %v187_v62 }
 0x10b   :  { %v205_v1 = vrot.slane %v204_v61, 2  ;;  %v200_v3 = vmul.f32 %v194_v60, %v188_v63 }
 0x10d   :  { %v209_v5 = vmax.f32 %v198_v2, %v200_v3  ;;  %v206_v6 = vmax.f32 %v204_v61, %v205_v1 }
 0x10f   :  { %v210_v7 = vmax.f32 %v209_v5, %v199_v4  ;;  %v207_v10 = vrot.slane %v206_v6, 1 }
 0x111   :  { %v211_v8 = vrot.slane %v210_v7, 4  ;;  %v208_v13 = vmax.f32 %v206_v6, %v207_v10 }
 0x113   :  { %v212_v9 = vmax.f32 %v210_v7, %v211_v8  ;;  %v217_v16 = vpack.c.bf16 %v208_v13, %v208_v13 }
 0x115   :  { %v213_v11 = vrot.slane %v212_v9, 2  ;;  %v244_v18 = vunpack.c.l.b16 %v217_v16 }
 0x117   :  { %v214_v12 = vmax.f32 %v212_v9, %v213_v11 }
 0x119   :  { %v215_v14 = vrot.slane %v214_v12, 1 }
 0x11b   :  { %v216_v15 = vmax.f32 %v214_v12, %v215_v14 }
 0x11d   :  { %v218_v17 = vpack.c.bf16 %v216_v15, %v216_v15 }
 0x11f   :  { %v245_v19 = vunpack.c.l.b16 %v218_v17 }
 0x121   :  { %v247_v20 = vsel %vm246_vm1, %v245_v19, %v244_v18 }
 0x122   :  { %v248_v21 = vpack.c.b16 %v247_v20, %v247_v20 }
 0x124   :  { %569 = vmatmul.mubr.bf16.vlgmr.msra.gmra.mrb[0].mxu1 %v248_v21 }
 0x1f7   :  { %v332_v24 = vpop.f32.mrb[0].mxu1 }
 0x1f8   :  { %v333_v25 = vadd.f32 %v477_v23, %v332_v24  ;;  %v570_v26 = vpop.f32.mrb[1].mxu1 }
 0x1f9   :  { %v335_v27 = vpop.f32.mrb[2].mxu1 }
 0x1fa   :  { %v338_v28 = vpack.c.bf16 %v333_v25, %v333_v25  ;;  %v571_v29 = vpop.f32.mrb[3].mxu1 }
 0x1fc   :  { %589 = vmatmul.mubr.bf16.vlgmr.msra.gmra.mrb[12].mxu0 %v338_v28 }
 0x2cf   :  { %v444_v31 = vpop.f32.mrb[12].mxu0 }
 0x2d0   :  { %v445_v32 = vadd.f32 %v486_v30, %v444_v31  ;;  %v590_v33 = vpop.f32.mrb[13].mxu0 }
 0x2d1   :  { %v447_v34 = vpop.f32.mrb[14].mxu0 }
 0x2d2   :  { %450 = vst [vmem:[#allocation2] sm:$0x3] %v445_v32  ;;  %v591_v35 = vpop.f32.mrb[15].mxu0 }
 0x2d3   :  { %633 = shalt.err (!%p630_p4)
}
 0x2d4   :  { %s634_s7 = scalar_lea.hbm %s856_s8, 32 }
 0x2d5   :  { %p635_p5 = scmp.ne.s32.totalorder %s856_s8, %s634_s7  ;;  %p638_p6 = scmp.lt.u32.totalorder %s634_s7, %s856_s8 }
 0x2d7   :  { %p640_p7 = pnand %p638_p6, %p635_p5 }
 0x2d9   :  { %643 = shalt.err (!%p640_p7)
}
 0x2da   :  { %460 = dma.vmem_to_hbm [thread:$0]  %s458_s25, 32, %s856_s8, [#allocation3]  }
 0x2db   :  { %644 = dma.done.wait [#allocation3], 32  }
 0x2dc   :  { %645 = vsyncadd [#allocation3], 4294967264 }
 0x2dd   :  { %464 = vsyncpa [#allocation3], 1 }

</bundles_post_ra>
